<compile_context>
chip_gen: v7x
topology: tpu7x:2x2x1
jax: 0.10.0
libtpu: 0.0.40
codegen_flags: <defaults>
</compile_context>

<pallas_src>
import functools

import jax
import jax.numpy as jnp
from jax.experimental import pallas as pl
from jax.experimental.pallas import tpu as pltpu


_LOGITS_BLOCK_BYTES = 2 * 1024 * 1024   # ~2 MiB of logits per grid step


def _round_up(x, m):
    return (x + m - 1) // m * m


def _cdiv(a, b):
    return (a + b - 1) // b


def _bf16_compute_ok():
    """bf16 VPU/EUP math only on v6e / v7x; v5e (and older) compute in f32."""
    try:
        kind = jax.devices()[0].device_kind.lower()
    except Exception:
        return False
    return ("v6" in kind) or ("v7" in kind)


def _make_kernel(num_classes, tile_c, compute_dtype, mask_c):
    """Kernel for one (row-tile i, class-tile k) grid step.

    logits_ref: [TB, TC] native dtype; target_ref: [TB, 1] int32; sel_ref: [TB, 1] f32
    m_sc / num_sc / den_sc: [TB, 1] f32 online-softmax running stats (persist over k).
    """

    def kernel(logits_ref, target_ref, sel_ref, m_sc, num_sc, den_sc):
        k = pl.program_id(1)

        @pl.when(k == 0)
        def _init():
            m_sc[...] = jnp.full_like(m_sc, -jnp.inf)
            num_sc[...] = jnp.zeros_like(num_sc)
            den_sc[...] = jnp.zeros_like(den_sc)

        x = logits_ref[...].astype(compute_dtype)                        # [TB, TC]
        col = k * tile_c + jax.lax.broadcasted_iota(jnp.int32, x.shape, 1)
        if mask_c:   # last class tile sticks out past C: exclude padding lanes
            x = jnp.where(col < num_classes, x,
                          jnp.asarray(-jnp.inf, dtype=compute_dtype))

        # Online softmax update: block math in compute_dtype, running stats in f32.
        m_prev = m_sc[...]                                               # [TB, 1] f32
        m_new = jnp.maximum(
            m_prev, jnp.max(x, axis=-1, keepdims=True).astype(jnp.float32))
        e = jnp.exp(x - m_new.astype(compute_dtype))                     # [TB, TC]
        hit = col == target_ref[...]                                     # [TB, TC]
        scale = jnp.exp(m_prev - m_new)                                  # [TB, 1] f32
        den_sc[...] = scale * den_sc[...] + jnp.sum(
            e.astype(jnp.float32), axis=-1, keepdims=True)
        num_sc[...] = scale * num_sc[...] + jnp.sum(
            jnp.where(hit, e, 0.0).astype(jnp.float32), axis=-1, keepdims=True)
        m_sc[...] = m_new

        @pl.when(k == pl.num_programs(1) - 1)
        def _finalize():
            sel_ref[...] = num_sc[...] * pl.reciprocal(den_sc[...], approx=False)

    return kernel


@functools.partial(jax.jit, static_argnames=("tile_b", "tile_c"))
def logit_loss(alpha, logits, target, *, tile_b=None, tile_c=None):
    """alpha: [A0, G]; logits: [B, C] (f32 or bf16); target: [B] int; B = A0*G."""
    A0 = alpha.shape[0]
    B, C = logits.shape
    assert B % A0 == 0, "batch must be divisible by alpha.shape[0]"
    G = B // A0

    in_bytes = jnp.dtype(logits.dtype).itemsize

    # ---- class (lane) tile: full C when it fits, else a multiple of 128 ----
    if tile_c is not None:
        tc = min(int(tile_c), C)
        if tc != C:
            tc = max(128, (tc // 128) * 128)
    elif C * 8 * in_bytes <= _LOGITS_BLOCK_BYTES:
        tc = C
    else:
        tc = max(128, (_LOGITS_BLOCK_BYTES // (8 * in_bytes)) // 128 * 128)
        tc = min(tc, C)
    num_k = _cdiv(C, tc)
    mask_c = (C % tc) != 0

    # ---- row (sublane) tile: ~2 MiB of logits per step, multiple of 8 ----
    b_pad = _round_up(B, 8)
    if tile_b is not None:
        tb = min(_round_up(int(tile_b), 8), b_pad)
    else:
        tb = max(8, (_LOGITS_BLOCK_BYTES // (tc * in_bytes)) // 8 * 8)
        tb = min(tb, b_pad)
        if B >= 16:   # keep >= 2 row tiles so both v7x TensorCores get work
            tb = min(tb, _round_up(_cdiv(B, 2), 8))
    num_b = _cdiv(B, tb)

    # ---- in-kernel compute dtype ----
    compute_dtype = (jnp.bfloat16
                     if (logits.dtype == jnp.bfloat16 and _bf16_compute_ok())
                     else jnp.float32)

    # ---- explicit VMEM budget: double-buffered input block + vector temps ----
    block_in = tb * tc * in_bytes
    temps = tb * tc * 12          # generous allowance for x / iota / e / select temps
    small = tb * 64               # target + output blocks + f32 scratch columns
    vmem_limit = int(min(56 * 1024 * 1024,
                         max(8 * 1024 * 1024, (2 * block_in + temps + small) * 3 // 2)))

    cost = pl.CostEstimate(
        flops=5 * B * C,
        transcendentals=B * C,
        bytes_accessed=B * C * in_bytes + 8 * B,
    )

    target2 = target.astype(jnp.int32).reshape(B, 1)

    selected = pl.pallas_call(
        _make_kernel(C, tc, compute_dtype, mask_c),
        out_shape=jax.ShapeDtypeStruct((B, 1), jnp.float32),
        grid=(num_b, num_k),
        in_specs=[
            pl.BlockSpec((tb, tc), lambda i, k: (i, k)),   # logits, native dtype
            pl.BlockSpec((tb, 1), lambda i, k: (i, 0)),    # target column
        ],
        out_specs=pl.BlockSpec((tb, 1), lambda i, k: (i, 0)),
        scratch_shapes=[pltpu.VMEM((tb, 1), jnp.float32)] * 3,
        compiler_params=pltpu.CompilerParams(
            dimension_semantics=("parallel", "arbitrary"),
            vmem_limit_bytes=vmem_limit,
        ),
        cost_estimate=cost,
    )(logits, target2)

    # Tiny finish in XLA: regroup to [A0, G], per-group L2 norm, sum.
    sel = selected.reshape(A0, G)
    diff = alpha.astype(jnp.float32) - sel
    return jnp.sum(jnp.sqrt(jnp.sum(diff * diff, axis=-1)))


def logit_loss_ref(alpha, logits, target):
    """Pure-JAX reference mirroring the PyTorch module."""
    sm = jax.nn.softmax(logits.astype(jnp.float32), axis=1)
    sel = sm[jnp.arange(logits.shape[0]), target]                  # class_select
    sel = sel.reshape(alpha.shape[0], -1)                          # .view(A0, -1)
    return jnp.sum(jnp.linalg.norm(alpha.astype(jnp.float32) - sel, axis=-1))


if __name__ == "__main__":
    def run_case(key, A0, G, C, dtype=jnp.float32, tol=1e-3, **kw):
        k1, k2, k3 = jax.random.split(key, 3)
        B = A0 * G
        logits = jax.random.normal(k1, (B, C), dtype=jnp.float32).astype(dtype)
        target = jax.random.randint(k2, (B,), 0, C, dtype=jnp.int32)
        alpha = jax.random.uniform(k3, (A0, G), dtype=jnp.float32)
        out = jax.block_until_ready(logit_loss(alpha, logits, target, **kw))
        ref = logit_loss_ref(alpha, logits, target)
        assert jnp.allclose(out, ref, atol=tol, rtol=tol), (out, ref)

    ks = jax.random.split(jax.random.PRNGKey(0), 4)

    # 1) Small single-tile case (module-scale shapes): B=8, C=32.
    run_case(ks[0], A0=2, G=4, C=32)
    # 2) B=20 -> partial last row tile handled with NO pre-kernel jnp.pad copy.
    run_case(ks[1], A0=4, G=5, C=48, tile_b=8)
    # 3) Class-tiled online-softmax path incl. lane masking (C % tile_c != 0).
    run_case(ks[2], A0=2, G=8, C=320, tile_b=8, tile_c=128)
    # 4) bf16 logits: native-dtype HBM loads; bf16 in-kernel math on v6e/v7x.
    run_case(ks[3], A0=2, G=8, C=256, dtype=jnp.bfloat16, tol=1e-1)

    print("KERNEL_OK")
</pallas_src>

<mosaic_0001>
module attributes {stable_mosaic.version = 11 : i64} {
  func.func @kernel(%arg0: i32, %arg1: i32, %arg2: memref<8x32xf32, #tpu.memory_space<vmem>>, %arg3: memref<8x1xi32, #tpu.memory_space<vmem>>, %arg4: memref<8x1xf32, #tpu.memory_space<vmem>>, %arg5: memref<8x1xf32, #tpu.memory_space<vmem>>, %arg6: memref<8x1xf32, #tpu.memory_space<vmem>>, %arg7: memref<8x1xf32, #tpu.memory_space<vmem>>) attributes {dimension_semantics = [#tpu.dimension_semantics<parallel>, #tpu.dimension_semantics<arbitrary>], iteration_bounds = array<i64: 1, 1>, scalar_prefetch = 0 : i64, scratch_operands = 3 : i64, tpu.core_type = #tpu.core_type<tc>, window_params = [{transform_indices = @transform_0, window_bounds = array<i64: 8, 32>}, {transform_indices = @transform_1, window_bounds = array<i64: 8, 1>}, {transform_indices = @transform_2, window_bounds = array<i64: 8, 1>}]} {
    %c0_i32 = arith.constant 0 : i32
    %0 = arith.cmpi eq, %arg1, %c0_i32 : i32
    %1 = arith.extui %0 : i1 to i32
    %c0_i32_0 = arith.constant 0 : i32
    %2 = arith.cmpi ne, %1, %c0_i32_0 : i32
    scf.if %2 {
      %cst_21 = arith.constant 0xFF800000 : f32
      %38 = vector.broadcast %cst_21 : f32 to vector<8x1xf32>
      %c0_22 = arith.constant 0 : index
      %c0_23 = arith.constant 0 : index
      %39 = vector.load %arg5[%c0_22, %c0_23] : memref<8x1xf32, #tpu.memory_space<vmem>>, vector<8x1xf32>
      tpu.vector_store %arg5[%c0_22, %c0_23], %38 {strides = array<i32>} : memref<8x1xf32, #tpu.memory_space<vmem>>, vector<8x1xf32>,
      %cst_24 = arith.constant 0.000000e+00 : f32
      %40 = vector.broadcast %cst_24 : f32 to vector<8x1xf32>
      %c0_25 = arith.constant 0 : index
      %c0_26 = arith.constant 0 : index
      %41 = vector.load %arg6[%c0_25, %c0_26] : memref<8x1xf32, #tpu.memory_space<vmem>>, vector<8x1xf32>
      tpu.vector_store %arg6[%c0_25, %c0_26], %40 {strides = array<i32>} : memref<8x1xf32, #tpu.memory_space<vmem>>, vector<8x1xf32>,
      %cst_27 = arith.constant 0.000000e+00 : f32
      %42 = vector.broadcast %cst_27 : f32 to vector<8x1xf32>
      %c0_28 = arith.constant 0 : index
      %c0_29 = arith.constant 0 : index
      %43 = vector.load %arg7[%c0_28, %c0_29] : memref<8x1xf32, #tpu.memory_space<vmem>>, vector<8x1xf32>
      tpu.vector_store %arg7[%c0_28, %c0_29], %42 {strides = array<i32>} : memref<8x1xf32, #tpu.memory_space<vmem>>, vector<8x1xf32>,
    } else {
    }
    %c0 = arith.constant 0 : index
    %c0_1 = arith.constant 0 : index
    %3 = vector.load %arg2[%c0, %c0_1] : memref<8x32xf32, #tpu.memory_space<vmem>>, vector<8x32xf32>
    %c32_i32 = arith.constant 32 : i32
    %4 = arith.muli %arg1, %c32_i32 : i32
    %5 = tpu.iota {dimensions = array<i32: 1>} : vector<8x32xi32>
    %6 = vector.broadcast %4 : i32 to vector<8x32xi32>
    %7 = arith.addi %6, %5 : vector<8x32xi32>
    %c0_2 = arith.constant 0 : index
    %c0_3 = arith.constant 0 : index
    %8 = vector.load %arg5[%c0_2, %c0_3] : memref<8x1xf32, #tpu.memory_space<vmem>>, vector<8x1xf32>
    %cst = arith.constant dense<0xFF800000> : vector<8xf32>
    %9 = vector.multi_reduction <maximumf>, %3, %cst [1] : vector<8x32xf32> to vector<8xf32>
    %10 = vector.shape_cast %9 : vector<8xf32> to vector<8x1xf32>
    %11 = arith.maximumf %8, %10 : vector<8x1xf32>
    %12 = vector.broadcast %11 : vector<8x1xf32> to vector<8x32xf32>
    %13 = arith.subf %3, %12 : vector<8x32xf32>
    %14 = math.exp %13 : vector<8x32xf32>
    %c0_4 = arith.constant 0 : index
    %c0_5 = arith.constant 0 : index
    %15 = vector.load %arg3[%c0_4, %c0_5] : memref<8x1xi32, #tpu.memory_space<vmem>>, vector<8x1xi32>
    %16 = vector.broadcast %15 : vector<8x1xi32> to vector<8x32xi32>
    %17 = arith.cmpi eq, %7, %16 : vector<8x32xi32>
    %18 = arith.subf %8, %11 : vector<8x1xf32>
    %19 = math.exp %18 : vector<8x1xf32>
    %c0_6 = arith.constant 0 : index
    %c0_7 = arith.constant 0 : index
    %20 = vector.load %arg7[%c0_6, %c0_7] : memref<8x1xf32, #tpu.memory_space<vmem>>, vector<8x1xf32>
    %21 = arith.mulf %19, %20 : vector<8x1xf32>
    %cst_8 = arith.constant dense<0.000000e+00> : vector<8xf32>
    %22 = vector.multi_reduction <add>, %14, %cst_8 [1] : vector<8x32xf32> to vector<8xf32>
    %23 = vector.shape_cast %22 : vector<8xf32> to vector<8x1xf32>
    %24 = arith.addf %21, %23 : vector<8x1xf32>
    %c0_9 = arith.constant 0 : index
    %c0_10 = arith.constant 0 : index
    %25 = vector.load %arg7[%c0_9, %c0_10] : memref<8x1xf32, #tpu.memory_space<vmem>>, vector<8x1xf32>
    tpu.vector_store %arg7[%c0_9, %c0_10], %24 {strides = array<i32>} : memref<8x1xf32, #tpu.memory_space<vmem>>, vector<8x1xf32>,
    %c0_11 = arith.constant 0 : index
    %c0_12 = arith.constant 0 : index
    %26 = vector.load %arg6[%c0_11, %c0_12] : memref<8x1xf32, #tpu.memory_space<vmem>>, vector<8x1xf32>
    %27 = arith.mulf %19, %26 : vector<8x1xf32>
    %cst_13 = arith.constant 0.000000e+00 : f32
    %28 = vector.broadcast %cst_13 : f32 to vector<8x32xf32>
    %29 = arith.select %17, %14, %28 : vector<8x32xi1>, vector<8x32xf32>
    %cst_14 = arith.constant dense<0.000000e+00> : vector<8xf32>
    %30 = vector.multi_reduction <add>, %29, %cst_14 [1] : vector<8x32xf32> to vector<8xf32>
    %31 = vector.shape_cast %30 : vector<8xf32> to vector<8x1xf32>
    %32 = arith.addf %27, %31 : vector<8x1xf32>
    %c0_15 = arith.constant 0 : index
    %c0_16 = arith.constant 0 : index
    %33 = vector.load %arg6[%c0_15, %c0_16] : memref<8x1xf32, #tpu.memory_space<vmem>>, vector<8x1xf32>
    tpu.vector_store %arg6[%c0_15, %c0_16], %32 {strides = array<i32>} : memref<8x1xf32, #tpu.memory_space<vmem>>, vector<8x1xf32>,
    %c0_17 = arith.constant 0 : index
    %c0_18 = arith.constant 0 : index
    %34 = vector.load %arg5[%c0_17, %c0_18] : memref<8x1xf32, #tpu.memory_space<vmem>>, vector<8x1xf32>
    tpu.vector_store %arg5[%c0_17, %c0_18], %11 {strides = array<i32>} : memref<8x1xf32, #tpu.memory_space<vmem>>, vector<8x1xf32>,
    %c0_i32_19 = arith.constant 0 : i32
    %35 = arith.cmpi eq, %arg1, %c0_i32_19 : i32
    %36 = arith.extui %35 : i1 to i32
    %c0_i32_20 = arith.constant 0 : i32
    %37 = arith.cmpi ne, %36, %c0_i32_20 : i32
    scf.if %37 {
      %c0_21 = arith.constant 0 : index
      %c0_22 = arith.constant 0 : index
      %38 = vector.load %arg6[%c0_21, %c0_22] : memref<8x1xf32, #tpu.memory_space<vmem>>, vector<8x1xf32>
      %c0_23 = arith.constant 0 : index
      %c0_24 = arith.constant 0 : index
      %39 = vector.load %arg7[%c0_23, %c0_24] : memref<8x1xf32, #tpu.memory_space<vmem>>, vector<8x1xf32>
      %40 = tpu.reciprocal %39 : vector<8x1xf32> -> vector<8x1xf32>
      %41 = arith.mulf %38, %40 : vector<8x1xf32>
      %c0_25 = arith.constant 0 : index
      %c0_26 = arith.constant 0 : index
      %42 = vector.load %arg4[%c0_25, %c0_26] : memref<8x1xf32, #tpu.memory_space<vmem>>, vector<8x1xf32>
      tpu.vector_store %arg4[%c0_25, %c0_26], %41 {strides = array<i32>} : memref<8x1xf32, #tpu.memory_space<vmem>>, vector<8x1xf32>,
    } else {
    }
    return
  }
  func.func @transform_0(%arg0: i32, %arg1: i32) -> (i32, i32) {
    %c0_i32 = arith.constant 0 : i32
    return %arg0, %arg1 : i32, i32
  }
  func.func @transform_1(%arg0: i32, %arg1: i32) -> (i32, i32) {
    %c0_i32 = arith.constant 0 : i32
    %c0_i32_0 = arith.constant 0 : i32
    return %arg0, %c0_i32 : i32, i32
  }
  func.func @transform_2(%arg0: i32, %arg1: i32) -> (i32, i32) {
    %c0_i32 = arith.constant 0 : i32
    %c0_i32_0 = arith.constant 0 : i32
    return %arg0, %c0_i32 : i32, i32
  }
}

</mosaic_0001>

<bundles_post_ra>
// kernel: logit_loss.1
= control target key start
LH: loop header
LB: loop body
LE: loop exit
PB: predicated region body
PF: predicated region fallthrough
CT: control target
= control target key end

     0   :  { %vm26_vm0 = vcmask 261120   ;;  %vm15_vm1 = vcmask 7168   ;;  %v87_v1 = vmov -inf   ;;  %v88_v3 = vmov 0   ;;  %s124_s0 = inlined_call_operand.vmem [shape: f32[8,32], index: 0, kind: input, shape index: {}]   ;;  %s125_s1 = inlined_call_operand.vmem [shape: s32[8,1], index: 1, kind: input, shape index: {}]   ;;  %s126_s2 = inlined_call_operand.vmem [shape: f32[8,1], index: 2, kind: output, shape index: {}]  }
   0x1   :  { %v19_v0 = vld [vmem:[%s124_s0] sm:$0xff]  ;;  %16 = vst.msk [vmem:[#allocation2] sm:$0xff] %vm15_vm1, %v87_v1  ;;  %79 = vset.pattern.permute.xlu0 %v88_v3  ;;  %80 = vset.pattern.permute.xlu1 %v88_v3  ;;  %v89_v5 = vmov 0.0   ;;  %v21_v13 = vlaneseq }
   0x2   :  { %v27_v2 = vsel %vm26_vm0, %v19_v0, -inf  ;;  %v39_v4 = vld [vmem:[%s125_s1] sm:$0xff]  ;;  %18 = vst.msk [vmem:[#allocation4] sm:$0xff] %vm15_vm1, %v89_v5  ;;  %17 = vst.msk [vmem:[#allocation3] sm:$0xff] %vm15_vm1, %v89_v5 }
   0x3   :  { %28 = vmax.xlane.f32.xlu0 %v27_v2  ;;  %41 = vperm.xlu1 %80, %v39_v4   ;;  %v22_v14 = vand.u32 127, %v21_v13 }
   0x8   :  { %v25_v6 = vld [vmem:[#allocation2] sm:$0xff] }
   0x9   :  { %v47_v22 = vld [vmem:[#allocation4] sm:$0xff]  ;;  %v55_v25 = vld [vmem:[#allocation3] sm:$0xff] }
  0x82   :  { %v42_v15 = vpop.permute.xlu1 %41 }
  0x83   :  { %vm43_vm2 = vcmp.eq.s32.totalorder %v22_v14, %v42_v15 }
  0x90   :  { %v29_v7 = vpop.xlane.xlu0 %28 }
  0x91   :  { %v30_v8 = vmax.f32 %v25_v6, %v29_v7 }
  0x93   :  { %v44_v9 = vsub.f32 %v25_v6, %v30_v8  ;;  %63 = vst.msk [vmem:[#allocation2] sm:$0xff] %vm15_vm1, %v30_v8  ;;  %33 = vperm.xlu0 %79, %v30_v8  }
  0x95   :  { %v45_v20 = vmul.f32 1.442695, %v44_v9 }
 0x112   :  { %v34_v10 = vpop.permute.xlu0 %33 }
 0x113   :  { %v36_v11 = vsub.f32 %v19_v0, %v34_v10 }
 0x115   :  { %v37_v12 = vmul.f32 1.442695, %v36_v11 }
 0x117   :  { %81 = vpow2.f32 %v37_v12 }
 0x118   :  { %83 = vpow2.f32 %v45_v20 }
 0x121   :  { %v82_v16 = vpop.eup %81 }
 0x122   :  { %v49_v17 = vsel %vm26_vm0, %v82_v16, 0.0  ;;  %v57_v18 = vsel %vm43_vm2, %v82_v16, 0.0  ;;  %v84_v21 = vpop.eup %83 }
 0x123   :  { %50 = vadd.xlane.f32.xlu1 %v49_v17  ;;  %v58_v19 = vsel %vm26_vm0, %v57_v18, 0.0  ;;  %v48_v23 = vmul.f32 %v84_v21, %v47_v22  ;;  %v56_v27 = vmul.f32 %v84_v21, %v55_v25 }
 0x127   :  { %59 = vadd.xlane.f32.xlu1 %v58_v19 }
 0x1b0   :  { %v51_v24 = vpop.xlane.xlu1 %50 }
 0x1b1   :  { %v52_v26 = vadd.f32 %v51_v24, %v48_v23 }
 0x1b3   :  { %54 = vst.msk [vmem:[#allocation4] sm:$0xff] %vm15_vm1, %v52_v26 }
 0x1b4   :  { %v60_v28 = vpop.xlane.xlu1 %59 }
 0x1b5   :  { %v61_v29 = vadd.f32 %v60_v28, %v56_v27 }
 0x1b7   :  { %62 = vst.msk [vmem:[#allocation3] sm:$0xff] %vm15_vm1, %v61_v29 }
 0x1ba   :  { %v68_v30 = vld [vmem:[#allocation4] sm:$0xff] }
 0x1bb   :  { %85 = vrcp.f32 %v68_v30 }
 0x1be   :  { %v67_v32 = vld [vmem:[#allocation3] sm:$0xff] }
 0x1c5   :  { %v86_v31 = vpop.eup %85 }
 0x1c6   :  { %v70_v33 = vmul.f32 %v86_v31, %v67_v32 }
 0x1c8   :  { %71 = vst.msk [vmem:[%s126_s2] sm:$0xff] %vm15_vm1, %v70_v33 }

</bundles_post_ra>
